<compile_context>
chip_gen: v6e
topology: v6e:2x2x1
jax: 0.10.0
libtpu: 0.0.40
codegen_flags: <defaults>
</compile_context>

<pallas_src>
import jax
import jax.numpy as jnp
from jax import lax
from jax.experimental import pallas as pl
from jax.experimental.pallas import tpu as pltpu


def _make_kernel(B, H, W, Cp, Cout, compute_dtype):
    HW = H * W
    PAD = W + 1  # flat zero padding on each side of the flattened image

    def kernel(x_ref, w1_ref, w2_ref, o_ref, xpad_ref, xwin_ref):
        # x_ref   : (B, Cp, HW)       flattened NCHW images (channel-padded)
        # w1_ref  : (Cout, 9*Cp)      conv1 weight, tap-major / cin-minor
        # w2_ref  : (Cout, Cout)      conv2 (1x1) weight
        # o_ref   : (B, Cout, HW)     flattened NCHW output
        # xpad_ref: (Cp, HW + 2*PAD)  zero-edged flat image (reused per image)
        # xwin_ref: (9*Cp, HW)        stacked 3x3 window slab (MXU rhs operand)

        # Zero only the 2*PAD edge columns (cheap; done every grid step so the
        # kernel stays correct when the "parallel" grid axis is sharded across
        # TensorCores, each owning a private scratch).
        edge = jnp.zeros((Cp, PAD), dtype=xpad_ref.dtype)
        xpad_ref[:, :PAD] = edge
        xpad_ref[:, PAD + HW:] = edge

        # Weights were already cast to the compute dtype in the wrapper.
        w1 = w1_ref[...]                                    # (Cout, 9*Cp)
        w2 = w2_ref[...]                                    # (Cout, Cout)

        # Column masks for the dx = +-1 taps (flat shifts wrap across rows),
        # hoisted out of the per-image / per-tap loops and pre-broadcast to
        # (Cp, HW) so no broadcast is re-materialized inside the loops.
        col = lax.broadcasted_iota(jnp.int32, (Cp, HW), 1) % W
        ok_left = col >= 1            # valid lanes when dx == -1
        ok_right = col <= W - 2       # valid lanes when dx == +1

        for b in range(B):            # unrolled; B is small and static
            xb = x_ref[b]                                   # (Cp, HW), input dtype

            # Single interior overwrite of the padded image; the optional
            # compute-dtype cast is fused into this one store.
            xpad_ref[:, PAD:PAD + HW] = xb.astype(xpad_ref.dtype)

            # Build the stacked window slab: xwin[tap*Cp + c, q] holds
            # x[c, h+dy, w+dx] (0 outside the image) for tap = (dy+1)*3+(dx+1).
            # Each tap is a contiguous lane-slice of xpad; masks are applied in
            # the same pass that writes the slab (8-aligned sublane stores).
            for dy in (-1, 0, 1):
                for dx in (-1, 0, 1):
                    tap = (dy + 1) * 3 + (dx + 1)
                    start = (dy + 1) * W + (dx + 1)          # static lane offset
                    win = xpad_ref[:, start:start + HW]      # (Cp, HW)
                    if dx == -1:
                        win = jnp.where(ok_left, win, jnp.zeros_like(win))
                    elif dx == 1:
                        win = jnp.where(ok_right, win, jnp.zeros_like(win))
                    xwin_ref[tap * Cp:(tap + 1) * Cp, :] = win

            # conv1 (3x3, pad=1) as ONE packed MXU matmul, f32 accumulation.
            h1 = jnp.dot(w1, xwin_ref[...],
                         preferred_element_type=jnp.float32)  # (Cout, HW)
            h1 = jnp.maximum(h1, 0.0)                         # ReLU (gn1 = identity)
            if compute_dtype is not None:
                h1 = h1.astype(compute_dtype)
            out = jnp.dot(w2, h1,
                          preferred_element_type=jnp.float32)  # conv2 (1x1)
            out = out + xb[:Cout, :].astype(jnp.float32)       # identity shortcut
            out = jnp.maximum(out, 0.0)                        # final ReLU
            o_ref[b] = out.astype(o_ref.dtype)

    return kernel


def basic_block2d_prop_begin(x, w1, w2, *, compute_dtype=None, max_batch_block=8):
    """Forward pass of BasicBlock2DPropBegin (stride=1, group_norm=False).

    x : (N, C, H, W)   NCHW input
    w1: (C, C, 3, 3)   conv1 weight (OIHW, bias=False)
    w2: (C, C, 1, 1)   conv2 weight (OIHW, bias=False)
    """
    N, Cin, H, W = x.shape
    Cout = w1.shape[0]
    # TODO(synk): only stride=1 with in_planes == planes (identity shortcut) and
    # group_norm=False are implemented; GroupNorm / projection shortcut are not.
    assert Cin == Cout, "identity shortcut requires in_planes == planes"
    assert w1.shape == (Cout, Cin, 3, 3) and w2.shape == (Cout, Cout, 1, 1)

    HW = H * W
    PAD = W + 1
    P = HW + 2 * PAD

    # bf16 MXU operands only pay off once the contraction (9*Cin) is deep
    # enough that the kernel is MXU-bound (v6e/v7x); at small Cin the casts
    # are pure extra VPU work, so gate on channel count.
    if compute_dtype is not None and Cin < 32:
        compute_dtype = None
    op_dtype = jnp.dtype(compute_dtype) if compute_dtype is not None else jnp.dtype(x.dtype)

    # Sublane-aligned channel count so every window-slab store is 8-aligned
    # (padded channels carry zero weights, so they contribute exact zeros).
    Cp = -(-Cin // 8) * 8

    # Images per grid step (largest divisor of N that is <= max_batch_block):
    # amortizes the ~0.35 us per-step overhead and issues larger DMAs.
    B = 1
    for cand in range(1, min(N, max_batch_block) + 1):
        if N % cand == 0:
            B = cand

    # Layout prep: flatten NCHW (metadata only) + tiny channel zero-pad when
    # Cin is not a multiple of 8.  No NCHW<->NHWC transposes, no spatial pads.
    xf = x.reshape(N, Cin, HW)
    if Cp != Cin:
        xf = jnp.pad(xf, ((0, 0), (0, Cp - Cin), (0, 0)))

    # conv1 weight packed tap-major / cin-minor (matching the slab layout):
    #   w1p[o, tap*Cp + i] = w1[o, i, kh, kw],  tap = kh*3 + kw
    w1t = jnp.transpose(w1, (0, 2, 3, 1))                    # (Cout, 3, 3, Cin)
    if Cp != Cin:
        w1t = jnp.pad(w1t, ((0, 0), (0, 0), (0, 0), (0, Cp - Cin)))
    w1p = w1t.reshape(Cout, 9 * Cp)
    w2p = w2.reshape(Cout, Cout)
    if compute_dtype is not None:
        w1p = w1p.astype(compute_dtype)
        w2p = w2p.astype(compute_dtype)

    kernel = _make_kernel(B, H, W, Cp, Cout, compute_dtype)

    # Explicit VMEM budget: double-buffered I/O blocks + weights + scratch
    # + a rough allowance for live f32 intermediates, with 2x margin.
    x_bytes = jnp.dtype(x.dtype).itemsize
    w_bytes = jnp.dtype(w1p.dtype).itemsize
    op_bytes = jnp.dtype(op_dtype).itemsize
    need = 2 * B * (Cp + Cout) * HW * x_bytes
    need += 2 * (Cout * 9 * Cp + Cout * Cout) * w_bytes
    need += (Cp * P + 9 * Cp * HW) * op_bytes
    need += 4 * B * Cout * HW * 4
    vmem_limit = int(min(64 << 20, max(2 * need, 16 << 20)))

    # TODO(synk): for production shapes (large C / HW) add a spatial grid axis
    # over >=512-lane HW tiles with a 2-row halo (occupies both v7x TensorCores
    # and keeps blocks inside v7x's 64 MiB VMEM), and build the windows with
    # pltpu.roll lane rotations instead of the padded scratch.
    out = pl.pallas_call(
        kernel,
        out_shape=jax.ShapeDtypeStruct((N, Cout, HW), x.dtype),
        grid_spec=pltpu.PrefetchScalarGridSpec(
            num_scalar_prefetch=0,
            grid=(N // B,),
            in_specs=[
                pl.BlockSpec((B, Cp, HW), lambda n: (n, 0, 0)),
                pl.BlockSpec((Cout, 9 * Cp), lambda n: (0, 0)),
                pl.BlockSpec((Cout, Cout), lambda n: (0, 0)),
            ],
            out_specs=pl.BlockSpec((B, Cout, HW), lambda n: (n, 0, 0)),
            scratch_shapes=[
                pltpu.VMEM((Cp, P), op_dtype),          # zero-edged flat image
                pltpu.VMEM((9 * Cp, HW), op_dtype),     # stacked window slab
            ],
        ),
        compiler_params=pltpu.CompilerParams(
            dimension_semantics=("parallel",),
            vmem_limit_bytes=vmem_limit,
        ),
    )(xf, w1p, w2p)

    return out.reshape(N, Cout, H, W)


def _reference(x, w1, w2):
    dn = ("NCHW", "OIHW", "NCHW")
    h = lax.conv_general_dilated(x, w1, (1, 1), ((1, 1), (1, 1)),
                                 dimension_numbers=dn,
                                 precision=lax.Precision.HIGHEST)
    h = jnp.maximum(h, 0.0)
    out = lax.conv_general_dilated(h, w2, (1, 1), ((0, 0), (0, 0)),
                                   dimension_numbers=dn,
                                   precision=lax.Precision.HIGHEST)
    out = out + x                      # identity shortcut (stride=1, Cin==Cout)
    return jnp.maximum(out, 0.0)


if __name__ == "__main__":
    fwd = jax.jit(basic_block2d_prop_begin,
                  static_argnames=("compute_dtype", "max_batch_block"))

    # --- Primary check: f32 path at the small demo shape (channel-padded path).
    key = jax.random.PRNGKey(0)
    k_x, k_w1, k_w2 = jax.random.split(key, 3)
    N, C, H, W = 2, 4, 16, 16
    x = jax.random.normal(k_x, (N, C, H, W), dtype=jnp.float32)
    w1 = jax.random.normal(k_w1, (C, C, 3, 3), dtype=jnp.float32) * (2.0 / (C * 9)) ** 0.5
    w2 = jax.random.normal(k_w2, (C, C, 1, 1), dtype=jnp.float32) * (2.0 / C) ** 0.5

    out = jax.block_until_ready(fwd(x, w1, w2))
    ref = _reference(x, w1, w2)
    assert out.shape == (N, C, H, W)
    assert jnp.allclose(out, ref, atol=1e-3, rtol=1e-3), "f32 mismatch vs reference"

    # --- Secondary check: bf16 MXU-operand path (only enabled for Cin >= 32).
    C2 = 32
    k_x2, k_w12, k_w22 = jax.random.split(jax.random.PRNGKey(1), 3)
    x2 = jax.random.normal(k_x2, (N, C2, H, W), dtype=jnp.float32)
    w12 = jax.random.normal(k_w12, (C2, C2, 3, 3), dtype=jnp.float32) * (2.0 / (C2 * 9)) ** 0.5
    w22 = jax.random.normal(k_w22, (C2, C2, 1, 1), dtype=jnp.float32) * (2.0 / C2) ** 0.5

    out2 = jax.block_until_ready(fwd(x2, w12, w22, compute_dtype=jnp.bfloat16))
    ref2 = _reference(x2, w12, w22)
    assert out2.shape == (N, C2, H, W)
    assert jnp.allclose(out2, ref2, atol=5e-2, rtol=5e-2), "bf16 mismatch vs reference"

    print("KERNEL_OK")
</pallas_src>

<mosaic_0001>
module attributes {stable_mosaic.version = 11 : i64} {
  func.func @kernel(%arg0: i32, %arg1: memref<2x8x256xf32, #tpu.memory_space<vmem>>, %arg2: memref<4x72xf32, #tpu.memory_space<vmem>>, %arg3: memref<4x4xf32, #tpu.memory_space<vmem>>, %arg4: memref<2x4x256xf32, #tpu.memory_space<vmem>>, %arg5: memref<8x290xf32, #tpu.memory_space<vmem>>, %arg6: memref<72x256xf32, #tpu.memory_space<vmem>>) attributes {dimension_semantics = [#tpu.dimension_semantics<parallel>], iteration_bounds = array<i64: 1>, scalar_prefetch = 0 : i64, scratch_operands = 2 : i64, tpu.core_type = #tpu.core_type<tc>, window_params = [{transform_indices = @transform_0, window_bounds = array<i64: 2, 8, 256>}, {pipeline_mode = #tpu.pipeline_mode<synchronous>, transform_indices = @transform_1, window_bounds = array<i64: 4, 72>}, {pipeline_mode = #tpu.pipeline_mode<synchronous>, transform_indices = @transform_2, window_bounds = array<i64: 4, 4>}, {transform_indices = @transform_3, window_bounds = array<i64: 2, 4, 256>}]} {
    %cst = arith.constant 0.000000e+00 : f32
    %0 = vector.broadcast %cst : f32 to vector<8x17xf32>
    %c0 = arith.constant 0 : index
    %c0_0 = arith.constant 0 : index
    %1 = vector.load %arg5[%c0, %c0_0] : memref<8x290xf32, #tpu.memory_space<vmem>>, vector<8x17xf32>
    tpu.vector_store %arg5[%c0, %c0_0], %0 {strides = array<i32>} : memref<8x290xf32, #tpu.memory_space<vmem>>, vector<8x17xf32>,
    %c0_1 = arith.constant 0 : index
    %c273 = arith.constant 273 : index
    %2 = vector.load %arg5[%c0_1, %c273] : memref<8x290xf32, #tpu.memory_space<vmem>>, vector<8x17xf32>
    tpu.vector_store %arg5[%c0_1, %c273], %0 {strides = array<i32>} : memref<8x290xf32, #tpu.memory_space<vmem>>, vector<8x17xf32>,
    %c0_2 = arith.constant 0 : index
    %c0_3 = arith.constant 0 : index
    %3 = vector.load %arg2[%c0_2, %c0_3] : memref<4x72xf32, #tpu.memory_space<vmem>>, vector<4x72xf32>
    %c0_4 = arith.constant 0 : index
    %c0_5 = arith.constant 0 : index
    %4 = vector.load %arg3[%c0_4, %c0_5] : memref<4x4xf32, #tpu.memory_space<vmem>>, vector<4x4xf32>
    %5 = tpu.iota {dimensions = array<i32: 1>} : vector<8x256xi32>
    %c16_i32 = arith.constant 16 : i32
    %c0_i32 = arith.constant 0 : i32
    %6 = arith.cmpi eq, %c16_i32, %c0_i32 : i32
    %c1_i32 = arith.constant 1 : i32
    %7 = arith.select %6, %c1_i32, %c16_i32 : i32
    %8 = vector.broadcast %7 : i32 to vector<8x256xi32>
    %9 = arith.remsi %5, %8 : vector<8x256xi32>
    %c0_i32_6 = arith.constant 0 : i32
    %10 = vector.broadcast %c0_i32_6 : i32 to vector<8x256xi32>
    %11 = arith.cmpi ne, %9, %10 : vector<8x256xi32>
    %c0_i32_7 = arith.constant 0 : i32
    %12 = vector.broadcast %c0_i32_7 : i32 to vector<8x256xi32>
    %13 = arith.cmpi slt, %9, %12 : vector<8x256xi32>
    %c0_i32_8 = arith.constant 0 : i32
    %14 = arith.cmpi slt, %7, %c0_i32_8 : i32
    %15 = vector.broadcast %14 : i1 to vector<8x256xi1>
    %16 = vector.broadcast %15 : vector<8x256xi1> to vector<8x256xi1>
    %17 = arith.xori %13, %16 : vector<8x256xi1>
    %18 = arith.andi %17, %11 : vector<8x256xi1>
    %19 = vector.broadcast %7 : i32 to vector<8x256xi32>
    %20 = arith.addi %9, %19 : vector<8x256xi32>
    %21 = arith.select %18, %20, %9 : vector<8x256xi1>, vector<8x256xi32>
    %c1_i32_9 = arith.constant 1 : i32
    %22 = vector.broadcast %c1_i32_9 : i32 to vector<8x256xi32>
    %23 = arith.cmpi sge, %21, %22 : vector<8x256xi32>
    %c14_i32 = arith.constant 14 : i32
    %24 = vector.broadcast %c14_i32 : i32 to vector<8x256xi32>
    %25 = arith.cmpi sle, %21, %24 : vector<8x256xi32>
    %c0_10 = arith.constant 0 : index
    %c0_11 = arith.constant 0 : index
    %c0_12 = arith.constant 0 : index
    %26 = vector.load %arg1[%c0_10, %c0_11, %c0_12] : memref<2x8x256xf32, #tpu.memory_space<vmem>>, vector<1x8x256xf32>
    %27 = vector.shape_cast %26 : vector<1x8x256xf32> to vector<8x256xf32>
    %c0_13 = arith.constant 0 : index
    %c17 = arith.constant 17 : index
    %28 = vector.load %arg5[%c0_13, %c17] : memref<8x290xf32, #tpu.memory_space<vmem>>, vector<8x256xf32>
    tpu.vector_store %arg5[%c0_13, %c17], %27 {strides = array<i32>} : memref<8x290xf32, #tpu.memory_space<vmem>>, vector<8x256xf32>,
    %c0_14 = arith.constant 0 : index
    %c0_15 = arith.constant 0 : index
    %29 = vector.load %arg5[%c0_14, %c0_15] : memref<8x290xf32, #tpu.memory_space<vmem>>, vector<8x256xf32>
    %cst_16 = arith.constant 0.000000e+00 : f32
    %30 = vector.broadcast %cst_16 : f32 to vector<8x256xf32>
    %31 = arith.select %23, %29, %30 : vector<8x256xi1>, vector<8x256xf32>
    %c0_17 = arith.constant 0 : index
    %c0_18 = arith.constant 0 : index
    %32 = vector.load %arg6[%c0_17, %c0_18] : memref<72x256xf32, #tpu.memory_space<vmem>>, vector<8x256xf32>
    tpu.vector_store %arg6[%c0_17, %c0_18], %31 {strides = array<i32>} : memref<72x256xf32, #tpu.memory_space<vmem>>, vector<8x256xf32>,
    %c0_19 = arith.constant 0 : index
    %c1 = arith.constant 1 : index
    %33 = vector.load %arg5[%c0_19, %c1] : memref<8x290xf32, #tpu.memory_space<vmem>>, vector<8x256xf32>
    %c8 = arith.constant 8 : index
    %c0_20 = arith.constant 0 : index
    %34 = vector.load %arg6[%c8, %c0_20] : memref<72x256xf32, #tpu.memory_space<vmem>>, vector<8x256xf32>
    tpu.vector_store %arg6[%c8, %c0_20], %33 {strides = array<i32>} : memref<72x256xf32, #tpu.memory_space<vmem>>, vector<8x256xf32>,
    %c0_21 = arith.constant 0 : index
    %c2 = arith.constant 2 : index
    %35 = vector.load %arg5[%c0_21, %c2] : memref<8x290xf32, #tpu.memory_space<vmem>>, vector<8x256xf32>
    %cst_22 = arith.constant 0.000000e+00 : f32
    %36 = vector.broadcast %cst_22 : f32 to vector<8x256xf32>
    %37 = arith.select %25, %35, %36 : vector<8x256xi1>, vector<8x256xf32>
    %c16 = arith.constant 16 : index
    %c0_23 = arith.constant 0 : index
    %38 = vector.load %arg6[%c16, %c0_23] : memref<72x256xf32, #tpu.memory_space<vmem>>, vector<8x256xf32>
    tpu.vector_store %arg6[%c16, %c0_23], %37 {strides = array<i32>} : memref<72x256xf32, #tpu.memory_space<vmem>>, vector<8x256xf32>,
    %c0_24 = arith.constant 0 : index
    %c16_25 = arith.constant 16 : index
    %39 = vector.load %arg5[%c0_24, %c16_25] : memref<8x290xf32, #tpu.memory_space<vmem>>, vector<8x256xf32>
    %cst_26 = arith.constant 0.000000e+00 : f32
    %40 = vector.broadcast %cst_26 : f32 to vector<8x256xf32>
    %41 = arith.select %23, %39, %40 : vector<8x256xi1>, vector<8x256xf32>
    %c24 = arith.constant 24 : index
    %c0_27 = arith.constant 0 : index
    %42 = vector.load %arg6[%c24, %c0_27] : memref<72x256xf32, #tpu.memory_space<vmem>>, vector<8x256xf32>
    tpu.vector_store %arg6[%c24, %c0_27], %41 {strides = array<i32>} : memref<72x256xf32, #tpu.memory_space<vmem>>, vector<8x256xf32>,
    %c0_28 = arith.constant 0 : index
    %c17_29 = arith.constant 17 : index
    %43 = vector.load %arg5[%c0_28, %c17_29] : memref<8x290xf32, #tpu.memory_space<vmem>>, vector<8x256xf32>
    %c32 = arith.constant 32 : index
    %c0_30 = arith.constant 0 : index
    %44 = vector.load %arg6[%c32, %c0_30] : memref<72x256xf32, #tpu.memory_space<vmem>>, vector<8x256xf32>
    tpu.vector_store %arg6[%c32, %c0_30], %43 {strides = array<i32>} : memref<72x256xf32, #tpu.memory_space<vmem>>, vector<8x256xf32>,
    %c0_31 = arith.constant 0 : index
    %c18 = arith.constant 18 : index
    %45 = vector.load %arg5[%c0_31, %c18] : memref<8x290xf32, #tpu.memory_space<vmem>>, vector<8x256xf32>
    %cst_32 = arith.constant 0.000000e+00 : f32
    %46 = vector.broadcast %cst_32 : f32 to vector<8x256xf32>
    %47 = arith.select %25, %45, %46 : vector<8x256xi1>, vector<8x256xf32>
    %c40 = arith.constant 40 : index
    %c0_33 = arith.constant 0 : index
    %48 = vector.load %arg6[%c40, %c0_33] : memref<72x256xf32, #tpu.memory_space<vmem>>, vector<8x256xf32>
    tpu.vector_store %arg6[%c40, %c0_33], %47 {strides = array<i32>} : memref<72x256xf32, #tpu.memory_space<vmem>>, vector<8x256xf32>,
    %c0_34 = arith.constant 0 : index
    %c32_35 = arith.constant 32 : index
    %49 = vector.load %arg5[%c0_34, %c32_35] : memref<8x290xf32, #tpu.memory_space<vmem>>, vector<8x256xf32>
    %cst_36 = arith.constant 0.000000e+00 : f32
    %50 = vector.broadcast %cst_36 : f32 to vector<8x256xf32>
    %51 = arith.select %23, %49, %50 : vector<8x256xi1>, vector<8x256xf32>
    %c48 = arith.constant 48 : index
    %c0_37 = arith.constant 0 : index
    %52 = vector.load %arg6[%c48, %c0_37] : memref<72x256xf32, #tpu.memory_space<vmem>>, vector<8x256xf32>
    tpu.vector_store %arg6[%c48, %c0_37], %51 {strides = array<i32>} : memref<72x256xf32, #tpu.memory_space<vmem>>, vector<8x256xf32>,
    %c0_38 = arith.constant 0 : index
    %c33 = arith.constant 33 : index
    %53 = vector.load %arg5[%c0_38, %c33] : memref<8x290xf32, #tpu.memory_space<vmem>>, vector<8x256xf32>
    %c56 = arith.constant 56 : index
    %c0_39 = arith.constant 0 : index
    %54 = vector.load %arg6[%c56, %c0_39] : memref<72x256xf32, #tpu.memory_space<vmem>>, vector<8x256xf32>
    tpu.vector_store %arg6[%c56, %c0_39], %53 {strides = array<i32>} : memref<72x256xf32, #tpu.memory_space<vmem>>, vector<8x256xf32>,
    %c0_40 = arith.constant 0 : index
    %c34 = arith.constant 34 : index
    %55 = vector.load %arg5[%c0_40, %c34] : memref<8x290xf32, #tpu.memory_space<vmem>>, vector<8x256xf32>
    %cst_41 = arith.constant 0.000000e+00 : f32
    %56 = vector.broadcast %cst_41 : f32 to vector<8x256xf32>
    %57 = arith.select %25, %55, %56 : vector<8x256xi1>, vector<8x256xf32>
    %c64 = arith.constant 64 : index
    %c0_42 = arith.constant 0 : index
    %58 = vector.load %arg6[%c64, %c0_42] : memref<72x256xf32, #tpu.memory_space<vmem>>, vector<8x256xf32>
    tpu.vector_store %arg6[%c64, %c0_42], %57 {strides = array<i32>} : memref<72x256xf32, #tpu.memory_space<vmem>>, vector<8x256xf32>,
    %c0_43 = arith.constant 0 : index
    %c0_44 = arith.constant 0 : index
    %59 = vector.load %arg6[%c0_43, %c0_44] : memref<72x256xf32, #tpu.memory_space<vmem>>, vector<72x256xf32>
    %cst_45 = arith.constant dense<0.000000e+00> : vector<4x256xf32>
    %60 = tpu.matmul %3, %59, %cst_45 {dimension_numbers = #tpu.dot_dimension_numbers<[1], [0], [0], [1], [0, 0, 1, 1], [], []>} : vector<4x72xf32>, vector<72x256xf32>, vector<4x256xf32> -> vector<4x256xf32>
    %cst_46 = arith.constant 0.000000e+00 : f32
    %61 = vector.broadcast %cst_46 : f32 to vector<4x256xf32>
    %62 = arith.maximumf %60, %61 : vector<4x256xf32>
    %cst_47 = arith.constant dense<0.000000e+00> : vector<4x256xf32>
    %63 = tpu.matmul %4, %62, %cst_47 {dimension_numbers = #tpu.dot_dimension_numbers<[1], [0], [0], [1], [0, 0, 1, 1], [], []>} : vector<4x4xf32>, vector<4x256xf32>, vector<4x256xf32> -> vector<4x256xf32>
    %64 = vector.extract_strided_slice %27 {offsets = [0, 0], sizes = [4, 256], strides = [1, 1]} : vector<8x256xf32> to vector<4x256xf32>
    %65 = arith.addf %63, %64 : vector<4x256xf32>
    %cst_48 = arith.constant 0.000000e+00 : f32
    %66 = vector.broadcast %cst_48 : f32 to vector<4x256xf32>
    %67 = arith.maximumf %65, %66 : vector<4x256xf32>
    %c0_49 = arith.constant 0 : index
    %c0_50 = arith.constant 0 : index
    %c0_51 = arith.constant 0 : index
    %68 = vector.load %arg4[%c0_49, %c0_50, %c0_51] : memref<2x4x256xf32, #tpu.memory_space<vmem>>, vector<1x4x256xf32>
    %69 = vector.shape_cast %68 : vector<1x4x256xf32> to vector<4x256xf32>
    %70 = vector.shape_cast %67 : vector<4x256xf32> to vector<1x4x256xf32>
    tpu.vector_store %arg4[%c0_49, %c0_50, %c0_51], %70 {strides = array<i32>} : memref<2x4x256xf32, #tpu.memory_space<vmem>>, vector<1x4x256xf32>,
    %c1_52 = arith.constant 1 : index
    %c0_53 = arith.constant 0 : index
    %c0_54 = arith.constant 0 : index
    %71 = vector.load %arg1[%c1_52, %c0_53, %c0_54] : memref<2x8x256xf32, #tpu.memory_space<vmem>>, vector<1x8x256xf32>
    %72 = vector.shape_cast %71 : vector<1x8x256xf32> to vector<8x256xf32>
    %c0_55 = arith.constant 0 : index
    %c17_56 = arith.constant 17 : index
    %73 = vector.load %arg5[%c0_55, %c17_56] : memref<8x290xf32, #tpu.memory_space<vmem>>, vector<8x256xf32>
    tpu.vector_store %arg5[%c0_55, %c17_56], %72 {strides = array<i32>} : memref<8x290xf32, #tpu.memory_space<vmem>>, vector<8x256xf32>,
    %c0_57 = arith.constant 0 : index
    %c0_58 = arith.constant 0 : index
    %74 = vector.load %arg5[%c0_57, %c0_58] : memref<8x290xf32, #tpu.memory_space<vmem>>, vector<8x256xf32>
    %cst_59 = arith.constant 0.000000e+00 : f32
    %75 = vector.broadcast %cst_59 : f32 to vector<8x256xf32>
    %76 = arith.select %23, %74, %75 : vector<8x256xi1>, vector<8x256xf32>
    %c0_60 = arith.constant 0 : index
    %c0_61 = arith.constant 0 : index
    %77 = vector.load %arg6[%c0_60, %c0_61] : memref<72x256xf32, #tpu.memory_space<vmem>>, vector<8x256xf32>
    tpu.vector_store %arg6[%c0_60, %c0_61], %76 {strides = array<i32>} : memref<72x256xf32, #tpu.memory_space<vmem>>, vector<8x256xf32>,
    %c0_62 = arith.constant 0 : index
    %c1_63 = arith.constant 1 : index
    %78 = vector.load %arg5[%c0_62, %c1_63] : memref<8x290xf32, #tpu.memory_space<vmem>>, vector<8x256xf32>
    %c8_64 = arith.constant 8 : index
    %c0_65 = arith.constant 0 : index
    %79 = vector.load %arg6[%c8_64, %c0_65] : memref<72x256xf32, #tpu.memory_space<vmem>>, vector<8x256xf32>
    tpu.vector_store %arg6[%c8_64, %c0_65], %78 {strides = array<i32>} : memref<72x256xf32, #tpu.memory_space<vmem>>, vector<8x256xf32>,
    %c0_66 = arith.constant 0 : index
    %c2_67 = arith.constant 2 : index
    %80 = vector.load %arg5[%c0_66, %c2_67] : memref<8x290xf32, #tpu.memory_space<vmem>>, vector<8x256xf32>
    %cst_68 = arith.constant 0.000000e+00 : f32
    %81 = vector.broadcast %cst_68 : f32 to vector<8x256xf32>
    %82 = arith.select %25, %80, %81 : vector<8x256xi1>, vector<8x256xf32>
    %c16_69 = arith.constant 16 : index
    %c0_70 = arith.constant 0 : index
    %83 = vector.load %arg6[%c16_69, %c0_70] : memref<72x256xf32, #tpu.memory_space<vmem>>, vector<8x256xf32>
    tpu.vector_store %arg6[%c16_69, %c0_70], %82 {strides = array<i32>} : memref<72x256xf32, #tpu.memory_space<vmem>>, vector<8x256xf32>,
    %c0_71 = arith.constant 0 : index
    %c16_72 = arith.constant 16 : index
    %84 = vector.load %arg5[%c0_71, %c16_72] : memref<8x290xf32, #tpu.memory_space<vmem>>, vector<8x256xf32>
    %cst_73 = arith.constant 0.000000e+00 : f32
    %85 = vector.broadcast %cst_73 : f32 to vector<8x256xf32>
    %86 = arith.select %23, %84, %85 : vector<8x256xi1>, vector<8x256xf32>
    %c24_74 = arith.constant 24 : index
    %c0_75 = arith.constant 0 : index
    %87 = vector.load %arg6[%c24_74, %c0_75] : memref<72x256xf32, #tpu.memory_space<vmem>>, vector<8x256xf32>
    tpu.vector_store %arg6[%c24_74, %c0_75], %86 {strides = array<i32>} : memref<72x256xf32, #tpu.memory_space<vmem>>, vector<8x256xf32>,
    %c0_76 = arith.constant 0 : index
    %c17_77 = arith.constant 17 : index
    %88 = vector.load %arg5[%c0_76, %c17_77] : memref<8x290xf32, #tpu.memory_space<vmem>>, vector<8x256xf32>
    %c32_78 = arith.constant 32 : index
    %c0_79 = arith.constant 0 : index
    %89 = vector.load %arg6[%c32_78, %c0_79] : memref<72x256xf32, #tpu.memory_space<vmem>>, vector<8x256xf32>
    tpu.vector_store %arg6[%c32_78, %c0_79], %88 {strides = array<i32>} : memref<72x256xf32, #tpu.memory_space<vmem>>, vector<8x256xf32>,
    %c0_80 = arith.constant 0 : index
    %c18_81 = arith.constant 18 : index
    %90 = vector.load %arg5[%c0_80, %c18_81] : memref<8x290xf32, #tpu.memory_space<vmem>>, vector<8x256xf32>
    %cst_82 = arith.constant 0.000000e+00 : f32
    %91 = vector.broadcast %cst_82 : f32 to vector<8x256xf32>
    %92 = arith.select %25, %90, %91 : vector<8x256xi1>, vector<8x256xf32>
    %c40_83 = arith.constant 40 : index
    %c0_84 = arith.constant 0 : index
    %93 = vector.load %arg6[%c40_83, %c0_84] : memref<72x256xf32, #tpu.memory_space<vmem>>, vector<8x256xf32>
    tpu.vector_store %arg6[%c40_83, %c0_84], %92 {strides = array<i32>} : memref<72x256xf32, #tpu.memory_space<vmem>>, vector<8x256xf32>,
    %c0_85 = arith.constant 0 : index
    %c32_86 = arith.constant 32 : index
    %94 = vector.load %arg5[%c0_85, %c32_86] : memref<8x290xf32, #tpu.memory_space<vmem>>, vector<8x256xf32>
    %cst_87 = arith.constant 0.000000e+00 : f32
    %95 = vector.broadcast %cst_87 : f32 to vector<8x256xf32>
    %96 = arith.select %23, %94, %95 : vector<8x256xi1>, vector<8x256xf32>
    %c48_88 = arith.constant 48 : index
    %c0_89 = arith.constant 0 : index
    %97 = vector.load %arg6[%c48_88, %c0_89] : memref<72x256xf32, #tpu.memory_space<vmem>>, vector<8x256xf32>
    tpu.vector_store %arg6[%c48_88, %c0_89], %96 {strides = array<i32>} : memref<72x256xf32, #tpu.memory_space<vmem>>, vector<8x256xf32>,
    %c0_90 = arith.constant 0 : index
    %c33_91 = arith.constant 33 : index
    %98 = vector.load %arg5[%c0_90, %c33_91] : memref<8x290xf32, #tpu.memory_space<vmem>>, vector<8x256xf32>
    %c56_92 = arith.constant 56 : index
    %c0_93 = arith.constant 0 : index
    %99 = vector.load %arg6[%c56_92, %c0_93] : memref<72x256xf32, #tpu.memory_space<vmem>>, vector<8x256xf32>
    tpu.vector_store %arg6[%c56_92, %c0_93], %98 {strides = array<i32>} : memref<72x256xf32, #tpu.memory_space<vmem>>, vector<8x256xf32>,
    %c0_94 = arith.constant 0 : index
    %c34_95 = arith.constant 34 : index
    %100 = vector.load %arg5[%c0_94, %c34_95] : memref<8x290xf32, #tpu.memory_space<vmem>>, vector<8x256xf32>
    %cst_96 = arith.constant 0.000000e+00 : f32
    %101 = vector.broadcast %cst_96 : f32 to vector<8x256xf32>
    %102 = arith.select %25, %100, %101 : vector<8x256xi1>, vector<8x256xf32>
    %c64_97 = arith.constant 64 : index
    %c0_98 = arith.constant 0 : index
    %103 = vector.load %arg6[%c64_97, %c0_98] : memref<72x256xf32, #tpu.memory_space<vmem>>, vector<8x256xf32>
    tpu.vector_store %arg6[%c64_97, %c0_98], %102 {strides = array<i32>} : memref<72x256xf32, #tpu.memory_space<vmem>>, vector<8x256xf32>,
    %c0_99 = arith.constant 0 : index
    %c0_100 = arith.constant 0 : index
    %104 = vector.load %arg6[%c0_99, %c0_100] : memref<72x256xf32, #tpu.memory_space<vmem>>, vector<72x256xf32>
    %cst_101 = arith.constant dense<0.000000e+00> : vector<4x256xf32>
    %105 = tpu.matmul %3, %104, %cst_101 {dimension_numbers = #tpu.dot_dimension_numbers<[1], [0], [0], [1], [0, 0, 1, 1], [], []>} : vector<4x72xf32>, vector<72x256xf32>, vector<4x256xf32> -> vector<4x256xf32>
    %cst_102 = arith.constant 0.000000e+00 : f32
    %106 = vector.broadcast %cst_102 : f32 to vector<4x256xf32>
    %107 = arith.maximumf %105, %106 : vector<4x256xf32>
    %cst_103 = arith.constant dense<0.000000e+00> : vector<4x256xf32>
    %108 = tpu.matmul %4, %107, %cst_103 {dimension_numbers = #tpu.dot_dimension_numbers<[1], [0], [0], [1], [0, 0, 1, 1], [], []>} : vector<4x4xf32>, vector<4x256xf32>, vector<4x256xf32> -> vector<4x256xf32>
    %109 = vector.extract_strided_slice %72 {offsets = [0, 0], sizes = [4, 256], strides = [1, 1]} : vector<8x256xf32> to vector<4x256xf32>
    %110 = arith.addf %108, %109 : vector<4x256xf32>
    %cst_104 = arith.constant 0.000000e+00 : f32
    %111 = vector.broadcast %cst_104 : f32 to vector<4x256xf32>
    %112 = arith.maximumf %110, %111 : vector<4x256xf32>
    %c1_105 = arith.constant 1 : index
    %c0_106 = arith.constant 0 : index
    %c0_107 = arith.constant 0 : index
    %113 = vector.load %arg4[%c1_105, %c0_106, %c0_107] : memref<2x4x256xf32, #tpu.memory_space<vmem>>, vector<1x4x256xf32>
    %114 = vector.shape_cast %113 : vector<1x4x256xf32> to vector<4x256xf32>
    %115 = vector.shape_cast %112 : vector<4x256xf32> to vector<1x4x256xf32>
    tpu.vector_store %arg4[%c1_105, %c0_106, %c0_107], %115 {strides = array<i32>} : memref<2x4x256xf32, #tpu.memory_space<vmem>>, vector<1x4x256xf32>,
    return
  }
  func.func @transform_0(%arg0: i32) -> (i32, i32, i32) {
    %c0_i32 = arith.constant 0 : i32
    %c0_i32_0 = arith.constant 0 : i32
    %c0_i32_1 = arith.constant 0 : i32
    return %arg0, %c0_i32, %c0_i32_0 : i32, i32, i32
  }
  func.func @transform_1(%arg0: i32) -> (i32, i32) {
    %c0_i32 = arith.constant 0 : i32
    %c0_i32_0 = arith.constant 0 : i32
    %c0_i32_1 = arith.constant 0 : i32
    return %c0_i32, %c0_i32_0 : i32, i32
  }
  func.func @transform_2(%arg0: i32) -> (i32, i32) {
    %c0_i32 = arith.constant 0 : i32
    %c0_i32_0 = arith.constant 0 : i32
    %c0_i32_1 = arith.constant 0 : i32
    return %c0_i32, %c0_i32_0 : i32, i32
  }
  func.func @transform_3(%arg0: i32) -> (i32, i32, i32) {
    %c0_i32 = arith.constant 0 : i32
    %c0_i32_0 = arith.constant 0 : i32
    %c0_i32_1 = arith.constant 0 : i32
    return %arg0, %c0_i32, %c0_i32_0 : i32, i32, i32
  }
}

</mosaic_0001>

<bundles_post_ra>
// kernel: basic_block2d_prop_begin.1
= control target key start
LH: loop header
LB: loop body
LE: loop exit
PB: predicated region body
PF: predicated region fallthrough
CT: control target
= control target key end

     0   :  { %vm14_vm0 = vcmask 138240   ;;  %vm16_vm1 = vcmask 277640   ;;  %v820_v1 = vmov 0.0   ;;  %s821_s14 = smov 17   ;;  %vm63_vm2 = vcmask 1047688   ;;  %s822_s17 = smov 94   ;;  %s1107_s0 = inlined_call_operand.vmem [shape: f32[2,8,256], index: 0, kind: input, shape index: {}]   ;;  %s1108_s1 = inlined_call_operand.vmem [shape: f32[4,72], index: 1, kind: input, shape index: {}]   ;;  %s1109_s2 = inlined_call_operand.vmem [shape: f32[4,4], index: 2, kind: input, shape index: {}]   ;;  %s1110_s3 = inlined_call_operand.vmem [shape: f32[2,4,256], index: 3, kind: output, shape index: {}]  }
   0x1   :  { %v853_v0 = vld [vmem:[%s1107_s0] sm:$0xff]  ;;  %15 = vst.msk [vmem:[#allocation2] sm:$0xff] %vm14_vm0, %v820_v1  ;;  %321 = vmatprep.mubr.f32.mxu0 %v820_v1  ;;  %405 = vmatprep.mubr.f32.mxu1 %v820_v1  ;;  %v865_v2 = vld [vmem:[%s1107_s0 + $0x8] sm:$0xff]  ;;  %s823_s18 = smov 95   ;;  %s824_s19 = smov 96   ;;  %v913_v8 = vld [vmem:[%s1107_s0 + $0x10] sm:$0xff]  ;;  %v20_v17 = vlaneseq }
   0x2   :  { %17 = vst.msk [vmem:[#allocation2 + $0x10] sm:$0xff] %vm16_vm1, %v820_v1  ;;  %55 = vrot.lane.b32.xlu0 %v853_v0, %s821_s14  ;;  %s825_s20 = smov 110   ;;  %s826_s21 = smov 111   ;;  %v926_v9 = vld [vmem:[%s1107_s0 + $0x18] sm:$0xff]  ;;  %vm226_vm3 = vcmask 769024   ;;  %vm207_vm6 = vcmask 777216  }
   0x3   :  { %s827_s22 = smov 112   ;;  %s828_s23 = smov 126   ;;  %v21_v20 = vand.u32 127, %v20_v17  ;;  %vm186_vm7 = vcmask 785408   ;;  %vm165_vm9 = vcmask 900096   ;;  %vm146_vm11 = vcmask 908288  }
   0x4   :  { %s829_s24 = smov 127   ;;  %vm125_vm12 = vcmask 916480   ;;  %vm104_vm13 = vcmask 1031168   ;;  %vm85_vm14 = vcmask 1039360   ;;  %v990_v61 = vld [vmem:[%s1108_s1] sm:$0xf] }
   0x5   :  { %v22_v23 = vadd.s32 128, %v21_v20  ;;  %v27_v29 = vand.u32 15, %v21_v20  ;;  %vm253_vm15 = vcmask 588800   ;;  %vm330_vm1 = vcmask 31744  }
   0x6   :  { %57 = vrot.lane.b32.xlu0 %v865_v2, %s821_s14 }
   0x7   :  { %v34_v26 = vand.u32 15, %v22_v23  ;;  %vm934_vm5 = vcmp.le.s32.totalorder %v27_v29, 14  ;;  %vm950_vm10 = vcmp.ge.s32.totalorder %v27_v29, 1 }
   0x9   :  { %vm930_vm4 = vcmp.le.s32.totalorder %v34_v26, 14  ;;  %vm946_vm8 = vcmp.ge.s32.totalorder %v34_v26, 1 }
  0x74   :  { %v56_v3 = vpop.permute.xlu0 %55 }
  0x75   :  { %64 = vst.msk [vmem:[#allocation2] sm:$0xff] %vm63_vm2, %v56_v3 }
  0x78   :  { %v58_v4 = vpop.permute.xlu0 %57 }
  0x79   :  { %66 = vst.msk [vmem:[#allocation2 + $0x10] sm:$0xff] %vm14_vm0, %v58_v4  ;;  %v894_v7 = vsel %vm14_vm0, %v56_v3, %v58_v4 }
  0x7c   :  { %v871_v5 = vld [vmem:[#allocation2] sm:$0xff] }
  0x7d   :  { %220 = vrot.lane.b32.xlu0 %v871_v5, %s822_s17 }
  0x80   :  { %v216_v6 = vld [vmem:[#allocation2 + $0x10] sm:$0xff] }
  0x81   :  { %224 = vrot.lane.b32.xlu1 %v216_v6, %s822_s17  ;;  %205 = vrot.lane.b32.xlu0 %v216_v6, %s823_s18 }
  0x85   :  { %201 = vrot.lane.b32.xlu1 %v871_v5, %s823_s18  ;;  %180 = vrot.lane.b32.xlu0 %v871_v5, %s824_s19 }
  0x89   :  { %184 = vrot.lane.b32.xlu1 %v216_v6, %s824_s19  ;;  %163 = vrot.lane.b32.xlu0 %v216_v6, %s825_s20 }
  0x8d   :  { %159 = vrot.lane.b32.xlu1 %v871_v5, %s825_s20  ;;  %140 = vrot.lane.b32.xlu0 %v871_v5, %s826_s21 }
  0x91   :  { %144 = vrot.lane.b32.xlu1 %v216_v6, %s826_s21  ;;  %123 = vrot.lane.b32.xlu0 %v216_v6, %s827_s22 }
  0x95   :  { %119 = vrot.lane.b32.xlu1 %v871_v5, %s827_s22  ;;  %98 = vrot.lane.b32.xlu0 %v871_v5, %s828_s23 }
  0x99   :  { %102 = vrot.lane.b32.xlu1 %v216_v6, %s828_s23  ;;  %182 = vrot.lane.b32.xlu0 %v894_v7, %s824_s19 }
  0x9d   :  { %222 = vrot.lane.b32.xlu1 %v894_v7, %s822_s17  ;;  %142 = vrot.lane.b32.xlu0 %v894_v7, %s826_s21 }
  0xa1   :  { %203 = vrot.lane.b32.xlu1 %v894_v7, %s823_s18  ;;  %100 = vrot.lane.b32.xlu0 %v894_v7, %s828_s23 }
  0xa5   :  { %161 = vrot.lane.b32.xlu1 %v894_v7, %s825_s20  ;;  %83 = vrot.lane.b32.xlu0 %v216_v6, %s829_s24 }
  0xa9   :  { %121 = vrot.lane.b32.xlu1 %v894_v7, %s827_s22  ;;  %424 = vrot.lane.b32.xlu0 %v913_v8, %s821_s14 }
  0xad   :  { %81 = vrot.lane.b32.xlu1 %v894_v7, %s829_s24 }
  0xb1   :  { %79 = vrot.lane.b32.xlu1 %v871_v5, %s829_s24 }
  0xb5   :  { %426 = vrot.lane.b32.xlu1 %v926_v9, %s821_s14 }
  0xef   :  { %v221_v10 = vpop.permute.xlu0 %220 }
  0xf3   :  { %v225_v11 = vpop.permute.xlu1 %224  ;;  %v206_v12 = vpop.permute.xlu0 %205 }
  0xf7   :  { %v202_v13 = vpop.permute.xlu1 %201  ;;  %v181_v14 = vpop.permute.xlu0 %180 }
  0xfb   :  { %v185_v15 = vpop.permute.xlu1 %184  ;;  %v164_v16 = vpop.permute.xlu0 %163 }
  0xff   :  { %v160_v18 = vpop.permute.xlu1 %159  ;;  %v141_v19 = vpop.permute.xlu0 %140 }
 0x103   :  { %v145_v21 = vpop.permute.xlu1 %144  ;;  %v124_v22 = vpop.permute.xlu0 %123 }
 0x107   :  { %v120_v24 = vpop.permute.xlu1 %119  ;;  %v99_v25 = vpop.permute.xlu0 %98 }
 0x10b   :  { %v103_v27 = vpop.permute.xlu1 %102  ;;  %v183_v28 = vpop.permute.xlu0 %182 }
 0x10c   :  { %v188_v42 = vsel %vm186_vm7, %v183_v28, %v185_v15  ;;  %v187_v43 = vsel %vm186_vm7, %v181_v14, %v183_v28  ;;  %v19_v28 = vld [vmem:[%s1109_s2] sm:$0xf] }
 0x10f   :  { %v223_v31 = vpop.permute.xlu1 %222  ;;  %v143_v32 = vpop.permute.xlu0 %142 }
 0x110   :  { %v228_v34 = vsel %vm226_vm3, %v223_v31, %v225_v11  ;;  %v227_v35 = vsel %vm226_vm3, %v221_v10, %v223_v31  ;;  %v148_v48 = vsel %vm146_vm11, %v143_v32, %v145_v21  ;;  %v147_v50 = vsel %vm146_vm11, %v141_v19, %v143_v32 }
 0x111   :  { %786 = vmatprep.subr.msk.mxu0 %vm930_vm4, %v228_v34 }
 0x112   :  { %787 = vmatpush1.msk.msra.mxu0 %vm934_vm5, %v227_v35 }
 0x113   :  { %v204_v36 = vpop.permute.xlu1 %203  ;;  %v101_v37 = vpop.permute.xlu0 %100 }
 0x114   :  { %v209_v38 = vsel %vm207_vm6, %v204_v36, %v206_v12  ;;  %v208_v39 = vsel %vm207_vm6, %v202_v13, %v204_v36  ;;  %v106_v54 = vsel %vm104_vm13, %v101_v37, %v103_v27  ;;  %v105_v55 = vsel %vm104_vm13, %v99_v25, %v101_v37 }
 0x115   :  { %273 = vmatprep.subr.mxu0 %v209_v38 }
 0x116   :  { %274 = vmatpush1.msra.mxu0 %v208_v39 }
 0x117   :  { %v162_v44 = vpop.permute.xlu1 %161  ;;  %788 = vmatprep.subr.msk.mxu0 %vm946_vm8, %v188_v42  ;;  %v84_v45 = vpop.permute.xlu0 %83 }
 0x118   :  { %v166_v46 = vsel %vm165_vm9, %v160_v18, %v162_v44  ;;  %v167_v47 = vsel %vm165_vm9, %v162_v44, %v164_v16  ;;  %789 = vmatpush1.msk.msra.mxu0 %vm950_vm10, %v187_v43 }
 0x119   :  { %790 = vmatprep.subr.msk.mxu0 %vm930_vm4, %v167_v47 }
 0x11a   :  { %791 = vmatpush1.msk.msra.mxu0 %vm934_vm5, %v166_v46 }
 0x11b   :  { %v122_v49 = vpop.permute.xlu1 %121  ;;  %279 = vmatprep.subr.mxu0 %v148_v48  ;;  %v425_v51 = vpop.permute.xlu0 %424 }
 0x11c   :  { %v126_v52 = vsel %vm125_vm12, %v120_v24, %v122_v49  ;;  %v127_v53 = vsel %vm125_vm12, %v122_v49, %v124_v22  ;;  %280 = vmatpush1.msra.mxu0 %v147_v50  ;;  %432 = vst.msk [vmem:[#allocation2] sm:$0xff] %vm63_vm2, %v425_v51 }
 0x11d   :  { %792 = vmatprep.subr.msk.mxu0 %vm946_vm8, %v127_v53 }
 0x11e   :  { %793 = vmatpush1.msk.msra.mxu0 %vm950_vm10, %v126_v52 }
 0x11f   :  { %v82_v56 = vpop.permute.xlu1 %81  ;;  %794 = vmatprep.subr.msk.mxu0 %vm930_vm4, %v106_v54 }
 0x120   :  { %795 = vmatpush1.msk.msra.mxu0 %vm934_vm5, %v105_v55  ;;  %v87_v57 = vsel %vm85_vm14, %v82_v56, %v84_v45 }
 0x121   :  { %285 = vmatprep.subr.mxu0 %v87_v57 }
 0x123   :  { %v80_v58 = vpop.permute.xlu1 %79  ;;  %v982_v59 = vld [vmem:[#allocation2] sm:$0xff] }
 0x124   :  { %v86_v60 = vsel %vm85_vm14, %v80_v58, %v82_v56  ;;  %581 = vrot.lane.b32.xlu0 %v982_v59, %s822_s17 }
 0x125   :  { %286 = vmatpush1.msra.mxu0 %v86_v60 }
 0x126   :  { %796 = vmatprep.subr.msk.mxu0 %vm946_vm8, %v894_v7 }
 0x127   :  { %797 = vmatpush1.msk.msra.mxu0 %vm950_vm10, %v871_v5  ;;  %v427_v62 = vpop.permute.xlu1 %426 }
 0x128   :  { %434 = vst.msk [vmem:[#allocation2 + $0x10] sm:$0xff] %vm14_vm0, %v427_v62  ;;  %775 = vmatmul.mubr.msk.f32.vlgmr.msra.gmra.mxu0 %vm253_vm15, %v990_v61  ;;  %v1002_v63 = vsel %vm14_vm0, %v425_v51, %v427_v62  ;;  %vm334_vm0 = vcmask 1043456  }
 0x129   :  { %756 = vmatprep.mubr.f32.mxu0 %v820_v1 }
 0x12f   :  { %v577_v3 = vld [vmem:[#allocation2 + $0x10] sm:$0xff] }
 0x130   :  { %585 = vrot.lane.b32.xlu1 %v577_v3, %s822_s17  ;;  %567 = vrot.lane.b32.xlu0 %v577_v3, %s823_s18 }
 0x134   :  { %563 = vrot.lane.b32.xlu1 %v982_v59, %s823_s18  ;;  %543 = vrot.lane.b32.xlu0 %v982_v59, %s824_s19 }
 0x138   :  { %547 = vrot.lane.b32.xlu1 %v577_v3, %s824_s19  ;;  %527 = vrot.lane.b32.xlu0 %v577_v3, %s825_s20 }
 0x13c   :  { %523 = vrot.lane.b32.xlu1 %v982_v59, %s825_s20  ;;  %505 = vrot.lane.b32.xlu0 %v982_v59, %s826_s21 }
 0x140   :  { %509 = vrot.lane.b32.xlu1 %v577_v3, %s826_s21  ;;  %489 = vrot.lane.b32.xlu0 %v577_v3, %s827_s22 }
 0x144   :  { %485 = vrot.lane.b32.xlu1 %v982_v59, %s827_s22  ;;  %465 = vrot.lane.b32.xlu0 %v982_v59, %s828_s23 }
 0x148   :  { %469 = vrot.lane.b32.xlu1 %v577_v3, %s828_s23  ;;  %583 = vrot.lane.b32.xlu0 %v1002_v63, %s822_s17 }
 0x14c   :  { %565 = vrot.lane.b32.xlu1 %v1002_v63, %s823_s18  ;;  %545 = vrot.lane.b32.xlu0 %v1002_v63, %s824_s19 }
 0x150   :  { %525 = vrot.lane.b32.xlu1 %v1002_v63, %s825_s20  ;;  %507 = vrot.lane.b32.xlu0 %v1002_v63, %s826_s21 }
 0x154   :  { %487 = vrot.lane.b32.xlu1 %v1002_v63, %s827_s22  ;;  %467 = vrot.lane.b32.xlu0 %v1002_v63, %s828_s23 }
 0x158   :  { %449 = vrot.lane.b32.xlu1 %v1002_v63, %s829_s24  ;;  %451 = vrot.lane.b32.xlu0 %v577_v3, %s829_s24 }
 0x15c   :  { %447 = vrot.lane.b32.xlu1 %v982_v59, %s829_s24 }
 0x196   :  { %v582_v4 = vpop.permute.xlu0 %581 }
 0x1a2   :  { %v586_v5 = vpop.permute.xlu1 %585  ;;  %v568_v6 = vpop.permute.xlu0 %567 }
 0x1a6   :  { %v564_v7 = vpop.permute.xlu1 %563  ;;  %v544_v10 = vpop.permute.xlu0 %543 }
 0x1aa   :  { %v548_v11 = vpop.permute.xlu1 %547  ;;  %v528_v12 = vpop.permute.xlu0 %527 }
 0x1ae   :  { %v524_v13 = vpop.permute.xlu1 %523  ;;  %v506_v14 = vpop.permute.xlu0 %505 }
 0x1b2   :  { %v510_v15 = vpop.permute.xlu1 %509  ;;  %v490_v16 = vpop.permute.xlu0 %489 }
 0x1b6   :  { %v486_v17 = vpop.permute.xlu1 %485  ;;  %v466_v18 = vpop.permute.xlu0 %465 }
 0x1ba   :  { %v470_v19 = vpop.permute.xlu1 %469  ;;  %v584_v20 = vpop.permute.xlu0 %583 }
 0x1bb   :  { %v588_v31 = vsel %vm226_vm3, %v584_v20, %v586_v5  ;;  %v587_v34 = vsel %vm226_vm3, %v582_v4, %v584_v20 }
 0x1be   :  { %v566_v21 = vpop.permute.xlu1 %565  ;;  %v546_v22 = vpop.permute.xlu0 %545 }
 0x1bf   :  { %v570_v35 = vsel %vm207_vm6, %v566_v21, %v568_v6  ;;  %v569_v36 = vsel %vm207_vm6, %v564_v7, %v566_v21  ;;  %v550_v37 = vsel %vm186_vm7, %v546_v22, %v548_v11  ;;  %v549_v38 = vsel %vm186_vm7, %v544_v10, %v546_v22 }
 0x1c2   :  { %v526_v23 = vpop.permute.xlu1 %525  ;;  %v508_v29 = vpop.permute.xlu0 %507 }
 0x1c3   :  { %v530_v42 = vsel %vm165_vm9, %v526_v23, %v528_v12  ;;  %v512_v44 = vsel %vm146_vm11, %v508_v29, %v510_v15  ;;  %v511_v45 = vsel %vm146_vm11, %v506_v14, %v508_v29 }
 0x1c6   :  { %v488_v32 = vpop.permute.xlu1 %487  ;;  %v468_v39 = vpop.permute.xlu0 %467 }
 0x1c7   :  { %v492_v46 = vsel %vm125_vm12, %v488_v32, %v490_v16  ;;  %v491_v47 = vsel %vm125_vm12, %v486_v17, %v488_v32  ;;  %v472_v49 = vsel %vm104_vm13, %v468_v39, %v470_v19  ;;  %v471_v51 = vsel %vm104_vm13, %v466_v18, %v468_v39 }
 0x1ca   :  { %v450_v43 = vpop.permute.xlu1 %449  ;;  %v452_v48 = vpop.permute.xlu0 %451 }
 0x1cb   :  { %v454_v52 = vsel %vm85_vm14, %v450_v43, %v452_v48 }
 0x1ce   :  { %v448_v50 = vpop.permute.xlu1 %447 }
 0x1cf   :  { %v453_v53 = vsel %vm85_vm14, %v448_v50, %v450_v43 }
 0x1e8   :  { %v323_v24 = vpop.f32.mrf.mxu0 }
 0x1e9   :  { %v328_v27 = vmax.f32 %v323_v24, 0.0 }
 0x1ea   :  { %v325_v25 = vpop.f32.mrf.mxu0 }
 0x1eb   :  { %v329_v26 = vmax.f32 %v325_v25, 0.0 }
 0x1ed   :  { %776 = vmatprep.subr.msk.mxu1 %vm334_vm0, %v329_v26 }
 0x1ee   :  { %777 = vmatpush1.msk.msra.mxu1 %vm334_vm0, %v328_v27 }
 0x1ef   :  { %778 = vmatmul.mubr.msk.f32.vlgmr.msra.gmra.mxu1 %vm330_vm1, %v19_v28  ;;  %798 = vmatprep.subr.msk.mxu1 %vm930_vm4, %v588_v31 }
 0x1f0   :  { %799 = vmatpush1.msk.msra.mxu1 %vm934_vm5, %v587_v34  ;;  %677 = vmatprep.mubr.f32.mxu1 %v820_v1  ;;  %v529_v1 = vsel %vm165_vm9, %v524_v13, %v526_v23 }
 0x1f1   :  { %629 = vmatprep.subr.mxu1 %v570_v35 }
 0x1f2   :  { %630 = vmatpush1.msra.mxu1 %v569_v36 }
 0x1f3   :  { %800 = vmatprep.subr.msk.mxu1 %vm946_vm8, %v550_v37 }
 0x1f4   :  { %801 = vmatpush1.msk.msra.mxu1 %vm950_vm10, %v549_v38 }
 0x1f5   :  { %802 = vmatprep.subr.msk.mxu1 %vm930_vm4, %v530_v42 }
 0x1f6   :  { %803 = vmatpush1.msk.msra.mxu1 %vm934_vm5, %v529_v1 }
 0x1f7   :  { %635 = vmatprep.subr.mxu1 %v512_v44 }
 0x1f8   :  { %636 = vmatpush1.msra.mxu1 %v511_v45 }
 0x1f9   :  { %804 = vmatprep.subr.msk.mxu1 %vm946_vm8, %v492_v46 }
 0x1fa   :  { %805 = vmatpush1.msk.msra.mxu1 %vm950_vm10, %v491_v47 }
 0x1fb   :  { %806 = vmatprep.subr.msk.mxu1 %vm930_vm4, %v472_v49 }
 0x1fc   :  { %807 = vmatpush1.msk.msra.mxu1 %vm934_vm5, %v471_v51 }
 0x1fd   :  { %641 = vmatprep.subr.mxu1 %v454_v52 }
 0x1fe   :  { %642 = vmatpush1.msra.mxu1 %v453_v53 }
 0x1ff   :  { %808 = vmatprep.subr.msk.mxu1 %vm946_vm8, %v1002_v63 }
 0x200   :  { %809 = vmatpush1.msk.msra.mxu1 %vm950_vm10, %v982_v59 }
 0x201   :  { %781 = vmatmul.mubr.msk.f32.vlgmr.msra.gmra.mxu1 %vm253_vm15, %v990_v61 }
 0x2af   :  { %v407_v30 = vpop.f32.mrf.mxu1 }
 0x2b0   :  { %v408_v33 = vadd.f32 %v407_v30, %v853_v0 }
 0x2b1   :  { %v409_v54 = vpop.f32.mrf.mxu1 }
 0x2b2   :  { %v412_v55 = vmax.f32 %v408_v33, 0.0  ;;  %v410_v56 = vadd.f32 %v409_v54, %v865_v2 }
 0x2b4   :  { %v413_v57 = vmax.f32 %v410_v56, 0.0 }
 0x2b6   :  { %v416_v58 = vcombine.low %v412_v55, %v413_v57 }
 0x2b8   :  { %418 = vst [vmem:[%s1110_s3] sm:$0xff] %v416_v58 }
 0x2c1   :  { %v679_v40 = vpop.f32.mrf.mxu1 }
 0x2c2   :  { %v684_v59 = vmax.f32 %v679_v40, 0.0 }
 0x2c3   :  { %v681_v60 = vpop.f32.mrf.mxu1 }
 0x2c4   :  { %v685_v41 = vmax.f32 %v681_v60, 0.0 }
 0x2c6   :  { %782 = vmatprep.subr.msk.mxu0 %vm334_vm0, %v685_v41 }
 0x2c7   :  { %783 = vmatpush1.msk.msra.mxu0 %vm334_vm0, %v684_v59 }
 0x2c8   :  { %784 = vmatmul.mubr.msk.f32.vlgmr.msra.gmra.mxu0 %vm330_vm1, %v19_v28 }
 0x388   :  { %v758_v0 = vpop.f32.mrf.mxu0 }
 0x389   :  { %v759_v61 = vadd.f32 %v913_v8, %v758_v0 }
 0x38a   :  { %v760_v2 = vpop.f32.mrf.mxu0 }
 0x38b   :  { %v761_v62 = vadd.f32 %v926_v9, %v760_v2  ;;  %v763_v63 = vmax.f32 %v759_v61, 0.0 }
 0x38d   :  { %v764_v3 = vmax.f32 %v761_v62, 0.0 }
 0x38f   :  { %v767_v4 = vcombine.low %v763_v63, %v764_v3 }
 0x391   :  { %785 = vst [vmem:[%s1110_s3 + $0x8] sm:$0xff] %v767_v4 }

</bundles_post_ra>
